<compile_context>
chip_gen: v7x
topology: tpu7x:2x2x1
jax: 0.10.0
libtpu: 0.0.40
codegen_flags: <defaults>
</compile_context>

<pallas_src>
import functools
import math

import jax
import jax.numpy as jnp
from jax.experimental import pallas as pl
from jax.experimental.pallas import tpu as pltpu


def _layer_norm(y, g, b, eps=1e-5):
    mu = jnp.mean(y, axis=-1, keepdims=True)
    var = jnp.mean((y - mu) ** 2, axis=-1, keepdims=True)
    return (y - mu) * jax.lax.rsqrt(var + eps) * g + b


def alibi_block_kernel(
    x_ref, wqkv_ref,
    ln1_g_ref, ln1_b_ref,
    w1_ref, b1_ref, w2_ref, b2_ref,
    ln2_g_ref, ln2_b_ref,
    out_ref, *rest,
    num_heads, head_dim, inv_d_k, causal, return_attn,
):
    # rest = (attn_ref, ctx_scratch) or (ctx_scratch,)
    if return_attn:
        attn_ref, ctx_ref = rest
    else:
        (ctx_ref,) = rest
        attn_ref = None

    x = x_ref[...]                         # (Bt, S, E)
    Bt, S, E = x.shape
    hd = head_dim
    N = num_heads * Bt                     # batched "head x batch" count

    x2d = x.reshape(Bt * S, E)             # merge leading dims (safe reshape)

    # --- QKV projection on the whole (Bt*S, E) slab -------------------------
    qkv = jnp.dot(x2d, wqkv_ref[...], preferred_element_type=jnp.float32)  # (Bt*S, 3E)

    # PyTorch chunk order in the module: key, query, value.
    # Gather heads into (N, S, hd) with n = h*Bt + b (leading-axis concat only).
    def gather_heads(col0):
        return jnp.concatenate(
            [qkv[:, col0 + h * hd: col0 + (h + 1) * hd].reshape(Bt, S, hd)
             for h in range(num_heads)],
            axis=0)

    kh = gather_heads(0)
    qh = gather_heads(E)
    vh = gather_heads(2 * E)

    # --- scores: one head-batched matmul, ALiBi bias built in-kernel --------
    score = jnp.einsum('nqd,nkd->nqk', qh, kh,
                       preferred_element_type=jnp.float32) * inv_d_k   # (N, S, S)

    h4 = jax.lax.broadcasted_iota(jnp.int32, (num_heads, Bt, S, S), 0)
    r4 = jax.lax.broadcasted_iota(jnp.int32, (num_heads, Bt, S, S), 2)
    c4 = jax.lax.broadcasted_iota(jnp.int32, (num_heads, Bt, S, S), 3)
    # slope_h = 1 / ((2**8)**(1/H))**(h+1) = exp(-(8*ln2/H) * (h+1))
    log_step = -(8.0 * math.log(2.0)) / num_heads
    slope = jnp.exp(log_step * (h4.astype(jnp.float32) + 1.0))
    rel = (c4 - r4).astype(jnp.float32)
    score = score + (slope * rel).reshape(N, S, S)

    if causal:
        score = jnp.where((c4 > r4).reshape(N, S, S), -jnp.inf, score)

    # --- softmax (stable); reciprocal runs on the EUP slot -------------------
    score = score - jnp.max(score, axis=-1, keepdims=True)
    p = jnp.exp(score)
    attn = p * pl.reciprocal(jnp.sum(p, axis=-1, keepdims=True), approx=True)

    if attn_ref is not None:
        # single bulk store, (H, Bt, S, S) block
        attn_ref[...] = attn.reshape(num_heads, Bt, S, S)

    # --- context: head-batched matmul, scatter into (Bt*S, E) scratch --------
    ctx = jnp.einsum('nqk,nkd->nqd', attn, vh,
                     preferred_element_type=jnp.float32)               # (N, S, hd)
    for h in range(num_heads):
        ctx_ref[:, h * hd:(h + 1) * hd] = ctx[h * Bt:(h + 1) * Bt].reshape(Bt * S, hd)

    # --- residual + LayerNorm 1 ----------------------------------------------
    x1 = _layer_norm(ctx_ref[...] + x2d, ln1_g_ref[...], ln1_b_ref[...])

    # --- FeedForward (fc1 -> relu -> fc2) -------------------------------------
    h1 = jnp.dot(x1, w1_ref[...], preferred_element_type=jnp.float32) + b1_ref[...]
    h1 = jnp.maximum(h1, 0.0)
    f = jnp.dot(h1, w2_ref[...], preferred_element_type=jnp.float32) + b2_ref[...]

    # --- residual + LayerNorm 2 -----------------------------------------------
    out_ref[...] = _layer_norm(f + x1, ln2_g_ref[...], ln2_b_ref[...]).reshape(Bt, S, E)


def get_alibi_slope(num_heads):
    x = (2 ** 8) ** (1.0 / num_heads)
    return jnp.asarray([1.0 / x ** (i + 1) for i in range(num_heads)],
                       dtype=jnp.float32)


def get_relative_positions(seq_len):
    c = jnp.arange(seq_len)[None, :]
    r = jnp.arange(seq_len)[:, None]
    return (c - r).astype(jnp.float32)


def alibi_block(x, params, *, num_heads, causal, block_batch=None, return_attn=True):
    B, S, E = x.shape
    if block_batch is None:
        block_batch = B
    assert B % block_batch == 0
    head_dim = E // num_heads
    d_hidden = params["w1"].shape[1]
    inv_d_k = 1.0 / math.sqrt(E)

    kernel = functools.partial(
        alibi_block_kernel,
        num_heads=num_heads, head_dim=head_dim, inv_d_k=inv_d_k,
        causal=causal, return_attn=return_attn,
    )

    # NOTE: weights use constant index maps; for large (non-toy) weights one
    # would add pipeline_mode=pl.Buffered(1) / tile the sequence dim for v7x.
    in_specs = [
        pl.BlockSpec((block_batch, S, E), lambda b: (b, 0, 0)),   # x
        pl.BlockSpec((E, 3 * E), lambda b: (0, 0)),               # W_qkv (transposed)
        pl.BlockSpec((1, E), lambda b: (0, 0)),                   # ln1 gamma
        pl.BlockSpec((1, E), lambda b: (0, 0)),                   # ln1 beta
        pl.BlockSpec((E, d_hidden), lambda b: (0, 0)),            # fc1 W (transposed)
        pl.BlockSpec((1, d_hidden), lambda b: (0, 0)),            # fc1 b
        pl.BlockSpec((d_hidden, E), lambda b: (0, 0)),            # fc2 W (transposed)
        pl.BlockSpec((1, E), lambda b: (0, 0)),                   # fc2 b
        pl.BlockSpec((1, E), lambda b: (0, 0)),                   # ln2 gamma
        pl.BlockSpec((1, E), lambda b: (0, 0)),                   # ln2 beta
    ]
    out_specs = [pl.BlockSpec((block_batch, S, E), lambda b: (b, 0, 0))]
    out_shape = [jax.ShapeDtypeStruct((B, S, E), jnp.float32)]
    if return_attn:
        # head-major layout (H, B, S, S) avoids any in-kernel transpose
        out_specs.append(
            pl.BlockSpec((num_heads, block_batch, S, S), lambda b: (0, b, 0, 0)))
        out_shape.append(
            jax.ShapeDtypeStruct((num_heads, B, S, S), jnp.float32))

    results = pl.pallas_call(
        kernel,
        grid=(B // block_batch,),
        in_specs=in_specs,
        out_specs=out_specs,
        out_shape=out_shape,
        scratch_shapes=[pltpu.VMEM((block_batch * S, E), jnp.float32)],
        compiler_params=pltpu.CompilerParams(
            dimension_semantics=("parallel",)),
    )(
        x, params["wqkv"],
        params["ln1_g"], params["ln1_b"],
        params["w1"], params["b1"], params["w2"], params["b2"],
        params["ln2_g"], params["ln2_b"],
    )

    out = results[0]
    if return_attn:
        attn = results[1]
        # attention_weights: list of (B, S, S), one per head (matches PyTorch output)
        return out, [attn[h] for h in range(num_heads)]
    return out, None


def reference_block(x, params, *, num_heads, causal):
    """Pure-JAX reference mirroring the PyTorch forward exactly."""
    B, S, E = x.shape
    hd = E // num_heads
    d_k = math.sqrt(E)
    qkv = x @ params["wqkv"]
    k, q, v = qkv[..., :E], qkv[..., E:2 * E], qkv[..., 2 * E:]
    k = k.reshape(B, S, num_heads, hd).transpose(0, 2, 3, 1)   # (B,H,hd,S)
    q = q.reshape(B, S, num_heads, hd).transpose(0, 2, 1, 3)   # (B,H,S,hd)
    v = v.reshape(B, S, num_heads, hd).transpose(0, 2, 1, 3)   # (B,H,S,hd)
    bias = get_alibi_slope(num_heads)[:, None, None] * get_relative_positions(S)[None]
    score = jnp.einsum("bhqd,bhdk->bhqk", q, k) / d_k + bias[None]
    if causal:
        mask = jnp.tril(jnp.ones((S, S)))
        score = jnp.where(mask == 0, -jnp.inf, score)
    attn = jax.nn.softmax(score, axis=-1)
    out = jnp.einsum("bhqk,bhkd->bhqd", attn, v).transpose(0, 2, 1, 3).reshape(B, S, E)

    def ln(y, g, b):
        mu = y.mean(-1, keepdims=True)
        var = ((y - mu) ** 2).mean(-1, keepdims=True)
        return (y - mu) / jnp.sqrt(var + 1e-5) * g + b

    x1 = ln(out + x, params["ln1_g"][0], params["ln1_b"][0])
    h1 = jnp.maximum(x1 @ params["w1"] + params["b1"][0], 0.0)
    f = h1 @ params["w2"] + params["b2"][0]
    x2 = ln(f + x1, params["ln2_g"][0], params["ln2_b"][0])
    return x2, attn


if __name__ == "__main__":
    # Small, deterministic config
    n_embd, num_heads, block_size, expansion = 32, 4, 8, 4
    causal = True
    B, S = 4, block_size
    d_hidden = n_embd * expansion

    key = jax.random.PRNGKey(0)
    ks = jax.random.split(key, 8)
    scale = 0.05
    params = {
        "wqkv": scale * jax.random.normal(ks[0], (n_embd, 3 * n_embd), jnp.float32),
        "ln1_g": jnp.ones((1, n_embd), jnp.float32),
        "ln1_b": jnp.zeros((1, n_embd), jnp.float32),
        "w1": scale * jax.random.normal(ks[1], (n_embd, d_hidden), jnp.float32),
        "b1": scale * jax.random.normal(ks[2], (1, d_hidden), jnp.float32),
        "w2": scale * jax.random.normal(ks[3], (d_hidden, n_embd), jnp.float32),
        "b2": scale * jax.random.normal(ks[4], (1, n_embd), jnp.float32),
        "ln2_g": jnp.ones((1, n_embd), jnp.float32),
        "ln2_b": jnp.zeros((1, n_embd), jnp.float32),
    }
    x = jax.random.normal(ks[5], (B, S, n_embd), jnp.float32)

    # 2 batch elements per grid step -> grid=(2,) parallel (good for v7x 2 TCs)
    out, attn_list = alibi_block(x, params, num_heads=num_heads, causal=causal,
                                 block_batch=2, return_attn=True)
    out = jax.block_until_ready(out)
    attn_list = [jax.block_until_ready(a) for a in attn_list]

    # Correctness check against a pure-JAX reference of the PyTorch forward.
    # Tolerance 1e-3 accounts for the approx EUP reciprocal in the softmax and
    # the exp-based (vs pow-based) in-kernel ALiBi slope.
    ref_out, ref_attn = reference_block(x, params, num_heads=num_heads, causal=causal)
    assert jnp.allclose(out, ref_out, atol=1e-3, rtol=1e-3)
    for h in range(num_heads):
        assert jnp.allclose(attn_list[h], ref_attn[:, h], atol=1e-3, rtol=1e-3)

    # Optional-attn path (skips the dominant (H,B,S,S) HBM store entirely).
    out2, _ = alibi_block(x, params, num_heads=num_heads, causal=causal,
                          block_batch=2, return_attn=False)
    out2 = jax.block_until_ready(out2)
    assert jnp.allclose(out2, ref_out, atol=1e-3, rtol=1e-3)

    print("KERNEL_OK")
</pallas_src>

<mosaic_0001>
module attributes {stable_mosaic.version = 11 : i64} {
  func.func @alibi_block_kernel(%arg0: i32, %arg1: memref<2x8x32xf32, #tpu.memory_space<vmem>>, %arg2: memref<32x96xf32, #tpu.memory_space<vmem>>, %arg3: memref<1x32xf32, #tpu.memory_space<vmem>>, %arg4: memref<1x32xf32, #tpu.memory_space<vmem>>, %arg5: memref<32x128xf32, #tpu.memory_space<vmem>>, %arg6: memref<1x128xf32, #tpu.memory_space<vmem>>, %arg7: memref<128x32xf32, #tpu.memory_space<vmem>>, %arg8: memref<1x32xf32, #tpu.memory_space<vmem>>, %arg9: memref<1x32xf32, #tpu.memory_space<vmem>>, %arg10: memref<1x32xf32, #tpu.memory_space<vmem>>, %arg11: memref<2x8x32xf32, #tpu.memory_space<vmem>>, %arg12: memref<4x2x8x8xf32, #tpu.memory_space<vmem>>, %arg13: memref<16x32xf32, #tpu.memory_space<vmem>>) attributes {dimension_semantics = [#tpu.dimension_semantics<parallel>], iteration_bounds = array<i64: 2>, scalar_prefetch = 0 : i64, scratch_operands = 1 : i64, tpu.core_type = #tpu.core_type<tc>, window_params = [{transform_indices = @transform_0, window_bounds = array<i64: 2, 8, 32>}, {pipeline_mode = #tpu.pipeline_mode<synchronous>, transform_indices = @transform_1, window_bounds = array<i64: 32, 96>}, {pipeline_mode = #tpu.pipeline_mode<synchronous>, transform_indices = @transform_2, window_bounds = array<i64: 1, 32>}, {pipeline_mode = #tpu.pipeline_mode<synchronous>, transform_indices = @transform_3, window_bounds = array<i64: 1, 32>}, {pipeline_mode = #tpu.pipeline_mode<synchronous>, transform_indices = @transform_4, window_bounds = array<i64: 32, 128>}, {pipeline_mode = #tpu.pipeline_mode<synchronous>, transform_indices = @transform_5, window_bounds = array<i64: 1, 128>}, {pipeline_mode = #tpu.pipeline_mode<synchronous>, transform_indices = @transform_6, window_bounds = array<i64: 128, 32>}, {pipeline_mode = #tpu.pipeline_mode<synchronous>, transform_indices = @transform_7, window_bounds = array<i64: 1, 32>}, {pipeline_mode = #tpu.pipeline_mode<synchronous>, transform_indices = @transform_8, window_bounds = array<i64: 1, 32>}, {pipeline_mode = #tpu.pipeline_mode<synchronous>, transform_indices = @transform_9, window_bounds = array<i64: 1, 32>}, {transform_indices = @transform_10, window_bounds = array<i64: 2, 8, 32>}, {transform_indices = @transform_11, window_bounds = array<i64: 4, 2, 8, 8>}]} {
    %c0 = arith.constant 0 : index
    %c0_0 = arith.constant 0 : index
    %c0_1 = arith.constant 0 : index
    %0 = vector.load %arg1[%c0, %c0_0, %c0_1] : memref<2x8x32xf32, #tpu.memory_space<vmem>>, vector<2x8x32xf32>
    %1 = vector.shape_cast %0 : vector<2x8x32xf32> to vector<16x32xf32>
    %c0_2 = arith.constant 0 : index
    %c0_3 = arith.constant 0 : index
    %2 = vector.load %arg2[%c0_2, %c0_3] : memref<32x96xf32, #tpu.memory_space<vmem>>, vector<32x96xf32>
    %cst = arith.constant dense<0.000000e+00> : vector<16x96xf32>
    %3 = tpu.matmul %1, %2, %cst {dimension_numbers = #tpu.dot_dimension_numbers<[1], [0], [0], [1], [0, 0, 1, 1], [], []>} : vector<16x32xf32>, vector<32x96xf32>, vector<16x96xf32> -> vector<16x96xf32>
    %4 = vector.extract_strided_slice %3 {offsets = [0, 0], sizes = [16, 8], strides = [1, 1]} : vector<16x96xf32> to vector<16x8xf32>
    %5 = vector.shape_cast %4 : vector<16x8xf32> to vector<2x8x8xf32>
    %6 = vector.extract_strided_slice %3 {offsets = [0, 8], sizes = [16, 8], strides = [1, 1]} : vector<16x96xf32> to vector<16x8xf32>
    %7 = vector.shape_cast %6 : vector<16x8xf32> to vector<2x8x8xf32>
    %8 = vector.extract_strided_slice %3 {offsets = [0, 16], sizes = [16, 8], strides = [1, 1]} : vector<16x96xf32> to vector<16x8xf32>
    %9 = vector.shape_cast %8 : vector<16x8xf32> to vector<2x8x8xf32>
    %10 = vector.extract_strided_slice %3 {offsets = [0, 24], sizes = [16, 8], strides = [1, 1]} : vector<16x96xf32> to vector<16x8xf32>
    %11 = vector.shape_cast %10 : vector<16x8xf32> to vector<2x8x8xf32>
    %12 = tpu.concatenate %5, %7, %9, %11 in 0 : vector<2x8x8xf32>, vector<2x8x8xf32>, vector<2x8x8xf32>, vector<2x8x8xf32> -> vector<8x8x8xf32>
    %13 = vector.extract_strided_slice %3 {offsets = [0, 32], sizes = [16, 8], strides = [1, 1]} : vector<16x96xf32> to vector<16x8xf32>
    %14 = vector.shape_cast %13 : vector<16x8xf32> to vector<2x8x8xf32>
    %15 = vector.extract_strided_slice %3 {offsets = [0, 40], sizes = [16, 8], strides = [1, 1]} : vector<16x96xf32> to vector<16x8xf32>
    %16 = vector.shape_cast %15 : vector<16x8xf32> to vector<2x8x8xf32>
    %17 = vector.extract_strided_slice %3 {offsets = [0, 48], sizes = [16, 8], strides = [1, 1]} : vector<16x96xf32> to vector<16x8xf32>
    %18 = vector.shape_cast %17 : vector<16x8xf32> to vector<2x8x8xf32>
    %19 = vector.extract_strided_slice %3 {offsets = [0, 56], sizes = [16, 8], strides = [1, 1]} : vector<16x96xf32> to vector<16x8xf32>
    %20 = vector.shape_cast %19 : vector<16x8xf32> to vector<2x8x8xf32>
    %21 = tpu.concatenate %14, %16, %18, %20 in 0 : vector<2x8x8xf32>, vector<2x8x8xf32>, vector<2x8x8xf32>, vector<2x8x8xf32> -> vector<8x8x8xf32>
    %22 = vector.extract_strided_slice %3 {offsets = [0, 64], sizes = [16, 8], strides = [1, 1]} : vector<16x96xf32> to vector<16x8xf32>
    %23 = vector.shape_cast %22 : vector<16x8xf32> to vector<2x8x8xf32>
    %24 = vector.extract_strided_slice %3 {offsets = [0, 72], sizes = [16, 8], strides = [1, 1]} : vector<16x96xf32> to vector<16x8xf32>
    %25 = vector.shape_cast %24 : vector<16x8xf32> to vector<2x8x8xf32>
    %26 = vector.extract_strided_slice %3 {offsets = [0, 80], sizes = [16, 8], strides = [1, 1]} : vector<16x96xf32> to vector<16x8xf32>
    %27 = vector.shape_cast %26 : vector<16x8xf32> to vector<2x8x8xf32>
    %28 = vector.extract_strided_slice %3 {offsets = [0, 88], sizes = [16, 8], strides = [1, 1]} : vector<16x96xf32> to vector<16x8xf32>
    %29 = vector.shape_cast %28 : vector<16x8xf32> to vector<2x8x8xf32>
    %30 = tpu.concatenate %23, %25, %27, %29 in 0 : vector<2x8x8xf32>, vector<2x8x8xf32>, vector<2x8x8xf32>, vector<2x8x8xf32> -> vector<8x8x8xf32>
    "tpu.trace_start"() <{level = 10 : i32, message = "nqd,nkd->nqk"}> : () -> ()
    %cst_4 = arith.constant dense<0.000000e+00> : vector<8x8x8xf32>
    %31 = tpu.matmul %21, %12, %cst_4 {dimension_numbers = #tpu.dot_dimension_numbers<[2], [2], [1], [1], [0, 0, 0, 1, 1, 1], [0], [0]>} : vector<8x8x8xf32>, vector<8x8x8xf32>, vector<8x8x8xf32> -> vector<8x8x8xf32>
    "tpu.trace_stop"() : () -> ()
    %cst_5 = arith.constant 0.176776692 : f32
    %32 = vector.broadcast %cst_5 : f32 to vector<8x8x8xf32>
    %33 = arith.mulf %31, %32 : vector<8x8x8xf32>
    %34 = tpu.iota {dimensions = array<i32: 0>} : vector<4x2x8x8xi32>
    %35 = tpu.iota {dimensions = array<i32: 2>} : vector<4x2x8x8xi32>
    %36 = tpu.iota {dimensions = array<i32: 3>} : vector<4x2x8x8xi32>
    %37 = arith.sitofp %34 : vector<4x2x8x8xi32> to vector<4x2x8x8xf32>
    %cst_6 = arith.constant 1.000000e+00 : f32
    %38 = vector.broadcast %cst_6 : f32 to vector<4x2x8x8xf32>
    %39 = arith.addf %37, %38 : vector<4x2x8x8xf32>
    %cst_7 = arith.constant -1.38629436 : f32
    %40 = vector.broadcast %cst_7 : f32 to vector<4x2x8x8xf32>
    %41 = arith.mulf %40, %39 : vector<4x2x8x8xf32>
    %42 = math.exp %41 : vector<4x2x8x8xf32>
    %43 = arith.subi %36, %35 : vector<4x2x8x8xi32>
    %44 = arith.sitofp %43 : vector<4x2x8x8xi32> to vector<4x2x8x8xf32>
    %45 = arith.mulf %42, %44 : vector<4x2x8x8xf32>
    %46 = vector.shape_cast %45 : vector<4x2x8x8xf32> to vector<8x8x8xf32>
    %47 = arith.addf %33, %46 : vector<8x8x8xf32>
    %48 = arith.cmpi sgt, %36, %35 : vector<4x2x8x8xi32>
    %49 = vector.shape_cast %48 : vector<4x2x8x8xi1> to vector<8x8x8xi1>
    %cst_8 = arith.constant 0xFF800000 : f32
    %50 = vector.broadcast %cst_8 : f32 to vector<8x8x8xf32>
    %51 = arith.select %49, %50, %47 : vector<8x8x8xi1>, vector<8x8x8xf32>
    %cst_9 = arith.constant dense<0xFF800000> : vector<8x8xf32>
    %52 = vector.multi_reduction <maximumf>, %51, %cst_9 [2] : vector<8x8x8xf32> to vector<8x8xf32>
    %53 = vector.shape_cast %52 : vector<8x8xf32> to vector<8x8x1xf32>
    %54 = vector.broadcast %53 : vector<8x8x1xf32> to vector<8x8x8xf32>
    %55 = arith.subf %51, %54 : vector<8x8x8xf32>
    %56 = math.exp %55 : vector<8x8x8xf32>
    %cst_10 = arith.constant dense<0.000000e+00> : vector<8x8xf32>
    %57 = vector.multi_reduction <add>, %56, %cst_10 [2] : vector<8x8x8xf32> to vector<8x8xf32>
    %58 = vector.shape_cast %57 : vector<8x8xf32> to vector<8x8x1xf32>
    %59 = tpu.reciprocal %58 {approx = true} : vector<8x8x1xf32> -> vector<8x8x1xf32>
    %60 = vector.broadcast %59 : vector<8x8x1xf32> to vector<8x8x8xf32>
    %61 = arith.mulf %56, %60 : vector<8x8x8xf32>
    %62 = vector.shape_cast %61 : vector<8x8x8xf32> to vector<4x2x8x8xf32>
    %c0_11 = arith.constant 0 : index
    %c0_12 = arith.constant 0 : index
    %c0_13 = arith.constant 0 : index
    %c0_14 = arith.constant 0 : index
    %63 = vector.load %arg12[%c0_11, %c0_12, %c0_13, %c0_14] : memref<4x2x8x8xf32, #tpu.memory_space<vmem>>, vector<4x2x8x8xf32>
    tpu.vector_store %arg12[%c0_11, %c0_12, %c0_13, %c0_14], %62 {strides = array<i32>} : memref<4x2x8x8xf32, #tpu.memory_space<vmem>>, vector<4x2x8x8xf32>,
    "tpu.trace_start"() <{level = 10 : i32, message = "nqk,nkd->nqd"}> : () -> ()
    %cst_15 = arith.constant dense<0.000000e+00> : vector<8x8x8xf32>
    %64 = tpu.matmul %61, %30, %cst_15 {dimension_numbers = #tpu.dot_dimension_numbers<[2], [1], [1], [2], [0, 0, 0, 1, 1, 2], [0], [0]>} : vector<8x8x8xf32>, vector<8x8x8xf32>, vector<8x8x8xf32> -> vector<8x8x8xf32>
    "tpu.trace_stop"() : () -> ()
    %65 = vector.extract_strided_slice %64 {offsets = [0, 0, 0], sizes = [2, 8, 8], strides = [1, 1, 1]} : vector<8x8x8xf32> to vector<2x8x8xf32>
    %66 = vector.shape_cast %65 : vector<2x8x8xf32> to vector<16x8xf32>
    %c0_16 = arith.constant 0 : index
    %c0_17 = arith.constant 0 : index
    %67 = vector.load %arg13[%c0_16, %c0_17] : memref<16x32xf32, #tpu.memory_space<vmem>>, vector<16x8xf32>
    tpu.vector_store %arg13[%c0_16, %c0_17], %66 {strides = array<i32>} : memref<16x32xf32, #tpu.memory_space<vmem>>, vector<16x8xf32>,
    %68 = vector.extract_strided_slice %64 {offsets = [2, 0, 0], sizes = [2, 8, 8], strides = [1, 1, 1]} : vector<8x8x8xf32> to vector<2x8x8xf32>
    %69 = vector.shape_cast %68 : vector<2x8x8xf32> to vector<16x8xf32>
    %c0_18 = arith.constant 0 : index
    %c8 = arith.constant 8 : index
    %70 = vector.load %arg13[%c0_18, %c8] : memref<16x32xf32, #tpu.memory_space<vmem>>, vector<16x8xf32>
    tpu.vector_store %arg13[%c0_18, %c8], %69 {strides = array<i32>} : memref<16x32xf32, #tpu.memory_space<vmem>>, vector<16x8xf32>,
    %71 = vector.extract_strided_slice %64 {offsets = [4, 0, 0], sizes = [2, 8, 8], strides = [1, 1, 1]} : vector<8x8x8xf32> to vector<2x8x8xf32>
    %72 = vector.shape_cast %71 : vector<2x8x8xf32> to vector<16x8xf32>
    %c0_19 = arith.constant 0 : index
    %c16 = arith.constant 16 : index
    %73 = vector.load %arg13[%c0_19, %c16] : memref<16x32xf32, #tpu.memory_space<vmem>>, vector<16x8xf32>
    tpu.vector_store %arg13[%c0_19, %c16], %72 {strides = array<i32>} : memref<16x32xf32, #tpu.memory_space<vmem>>, vector<16x8xf32>,
    %74 = vector.extract_strided_slice %64 {offsets = [6, 0, 0], sizes = [2, 8, 8], strides = [1, 1, 1]} : vector<8x8x8xf32> to vector<2x8x8xf32>
    %75 = vector.shape_cast %74 : vector<2x8x8xf32> to vector<16x8xf32>
    %c0_20 = arith.constant 0 : index
    %c24 = arith.constant 24 : index
    %76 = vector.load %arg13[%c0_20, %c24] : memref<16x32xf32, #tpu.memory_space<vmem>>, vector<16x8xf32>
    tpu.vector_store %arg13[%c0_20, %c24], %75 {strides = array<i32>} : memref<16x32xf32, #tpu.memory_space<vmem>>, vector<16x8xf32>,
    %c0_21 = arith.constant 0 : index
    %c0_22 = arith.constant 0 : index
    %77 = vector.load %arg13[%c0_21, %c0_22] : memref<16x32xf32, #tpu.memory_space<vmem>>, vector<16x32xf32>
    %78 = arith.addf %77, %1 : vector<16x32xf32>
    %c0_23 = arith.constant 0 : index
    %c0_24 = arith.constant 0 : index
    %79 = vector.load %arg3[%c0_23, %c0_24] : memref<1x32xf32, #tpu.memory_space<vmem>>, vector<1x32xf32>
    %c0_25 = arith.constant 0 : index
    %c0_26 = arith.constant 0 : index
    %80 = vector.load %arg4[%c0_25, %c0_26] : memref<1x32xf32, #tpu.memory_space<vmem>>, vector<1x32xf32>
    %cst_27 = arith.constant dense<0.000000e+00> : vector<16xf32>
    %81 = vector.multi_reduction <add>, %78, %cst_27 [1] : vector<16x32xf32> to vector<16xf32>
    %82 = vector.shape_cast %81 : vector<16xf32> to vector<16x1xf32>
    %cst_28 = arith.constant 3.200000e+01 : f32
    %83 = vector.broadcast %cst_28 : f32 to vector<16x1xf32>
    %84 = arith.divf %82, %83 : vector<16x1xf32>
    %85 = vector.broadcast %84 : vector<16x1xf32> to vector<16x32xf32>
    %86 = arith.subf %78, %85 : vector<16x32xf32>
    %87 = arith.mulf %86, %86 : vector<16x32xf32>
    %cst_29 = arith.constant dense<0.000000e+00> : vector<16xf32>
    %88 = vector.multi_reduction <add>, %87, %cst_29 [1] : vector<16x32xf32> to vector<16xf32>
    %89 = vector.shape_cast %88 : vector<16xf32> to vector<16x1xf32>
    %cst_30 = arith.constant 3.200000e+01 : f32
    %90 = vector.broadcast %cst_30 : f32 to vector<16x1xf32>
    %91 = arith.divf %89, %90 : vector<16x1xf32>
    %92 = vector.broadcast %84 : vector<16x1xf32> to vector<16x32xf32>
    %93 = arith.subf %78, %92 : vector<16x32xf32>
    %cst_31 = arith.constant 9.99999974E-6 : f32
    %94 = vector.broadcast %cst_31 : f32 to vector<16x1xf32>
    %95 = arith.addf %91, %94 : vector<16x1xf32>
    %96 = math.rsqrt %95 : vector<16x1xf32>
    %97 = vector.broadcast %96 : vector<16x1xf32> to vector<16x32xf32>
    %98 = arith.mulf %93, %97 : vector<16x32xf32>
    %99 = vector.broadcast %79 : vector<1x32xf32> to vector<16x32xf32>
    %100 = arith.mulf %98, %99 : vector<16x32xf32>
    %101 = vector.broadcast %80 : vector<1x32xf32> to vector<16x32xf32>
    %102 = arith.addf %100, %101 : vector<16x32xf32>
    %c0_32 = arith.constant 0 : index
    %c0_33 = arith.constant 0 : index
    %103 = vector.load %arg5[%c0_32, %c0_33] : memref<32x128xf32, #tpu.memory_space<vmem>>, vector<32x128xf32>
    %cst_34 = arith.constant dense<0.000000e+00> : vector<16x128xf32>
    %104 = tpu.matmul %102, %103, %cst_34 {dimension_numbers = #tpu.dot_dimension_numbers<[1], [0], [0], [1], [0, 0, 1, 1], [], []>} : vector<16x32xf32>, vector<32x128xf32>, vector<16x128xf32> -> vector<16x128xf32>
    %c0_35 = arith.constant 0 : index
    %c0_36 = arith.constant 0 : index
    %105 = vector.load %arg6[%c0_35, %c0_36] : memref<1x128xf32, #tpu.memory_space<vmem>>, vector<1x128xf32>
    %106 = vector.broadcast %105 : vector<1x128xf32> to vector<16x128xf32>
    %107 = arith.addf %104, %106 : vector<16x128xf32>
    %cst_37 = arith.constant 0.000000e+00 : f32
    %108 = vector.broadcast %cst_37 : f32 to vector<16x128xf32>
    %109 = arith.maximumf %107, %108 : vector<16x128xf32>
    %c0_38 = arith.constant 0 : index
    %c0_39 = arith.constant 0 : index
    %110 = vector.load %arg7[%c0_38, %c0_39] : memref<128x32xf32, #tpu.memory_space<vmem>>, vector<128x32xf32>
    %cst_40 = arith.constant dense<0.000000e+00> : vector<16x32xf32>
    %111 = tpu.matmul %109, %110, %cst_40 {dimension_numbers = #tpu.dot_dimension_numbers<[1], [0], [0], [1], [0, 0, 1, 1], [], []>} : vector<16x128xf32>, vector<128x32xf32>, vector<16x32xf32> -> vector<16x32xf32>
    %c0_41 = arith.constant 0 : index
    %c0_42 = arith.constant 0 : index
    %112 = vector.load %arg8[%c0_41, %c0_42] : memref<1x32xf32, #tpu.memory_space<vmem>>, vector<1x32xf32>
    %113 = vector.broadcast %112 : vector<1x32xf32> to vector<16x32xf32>
    %114 = arith.addf %111, %113 : vector<16x32xf32>
    %115 = arith.addf %114, %102 : vector<16x32xf32>
    %c0_43 = arith.constant 0 : index
    %c0_44 = arith.constant 0 : index
    %116 = vector.load %arg9[%c0_43, %c0_44] : memref<1x32xf32, #tpu.memory_space<vmem>>, vector<1x32xf32>
    %c0_45 = arith.constant 0 : index
    %c0_46 = arith.constant 0 : index
    %117 = vector.load %arg10[%c0_45, %c0_46] : memref<1x32xf32, #tpu.memory_space<vmem>>, vector<1x32xf32>
    %cst_47 = arith.constant dense<0.000000e+00> : vector<16xf32>
    %118 = vector.multi_reduction <add>, %115, %cst_47 [1] : vector<16x32xf32> to vector<16xf32>
    %119 = vector.shape_cast %118 : vector<16xf32> to vector<16x1xf32>
    %cst_48 = arith.constant 3.200000e+01 : f32
    %120 = vector.broadcast %cst_48 : f32 to vector<16x1xf32>
    %121 = arith.divf %119, %120 : vector<16x1xf32>
    %122 = vector.broadcast %121 : vector<16x1xf32> to vector<16x32xf32>
    %123 = arith.subf %115, %122 : vector<16x32xf32>
    %124 = arith.mulf %123, %123 : vector<16x32xf32>
    %cst_49 = arith.constant dense<0.000000e+00> : vector<16xf32>
    %125 = vector.multi_reduction <add>, %124, %cst_49 [1] : vector<16x32xf32> to vector<16xf32>
    %126 = vector.shape_cast %125 : vector<16xf32> to vector<16x1xf32>
    %cst_50 = arith.constant 3.200000e+01 : f32
    %127 = vector.broadcast %cst_50 : f32 to vector<16x1xf32>
    %128 = arith.divf %126, %127 : vector<16x1xf32>
    %129 = vector.broadcast %121 : vector<16x1xf32> to vector<16x32xf32>
    %130 = arith.subf %115, %129 : vector<16x32xf32>
    %cst_51 = arith.constant 9.99999974E-6 : f32
    %131 = vector.broadcast %cst_51 : f32 to vector<16x1xf32>
    %132 = arith.addf %128, %131 : vector<16x1xf32>
    %133 = math.rsqrt %132 : vector<16x1xf32>
    %134 = vector.broadcast %133 : vector<16x1xf32> to vector<16x32xf32>
    %135 = arith.mulf %130, %134 : vector<16x32xf32>
    %136 = vector.broadcast %116 : vector<1x32xf32> to vector<16x32xf32>
    %137 = arith.mulf %135, %136 : vector<16x32xf32>
    %138 = vector.broadcast %117 : vector<1x32xf32> to vector<16x32xf32>
    %139 = arith.addf %137, %138 : vector<16x32xf32>
    %140 = vector.shape_cast %139 : vector<16x32xf32> to vector<2x8x32xf32>
    %c0_52 = arith.constant 0 : index
    %c0_53 = arith.constant 0 : index
    %c0_54 = arith.constant 0 : index
    %141 = vector.load %arg11[%c0_52, %c0_53, %c0_54] : memref<2x8x32xf32, #tpu.memory_space<vmem>>, vector<2x8x32xf32>
    tpu.vector_store %arg11[%c0_52, %c0_53, %c0_54], %140 {strides = array<i32>} : memref<2x8x32xf32, #tpu.memory_space<vmem>>, vector<2x8x32xf32>,
    return
  }
  func.func @transform_0(%arg0: i32) -> (i32, i32, i32) {
    %c0_i32 = arith.constant 0 : i32
    %c0_i32_0 = arith.constant 0 : i32
    %c0_i32_1 = arith.constant 0 : i32
    return %arg0, %c0_i32, %c0_i32_0 : i32, i32, i32
  }
  func.func @transform_1(%arg0: i32) -> (i32, i32) {
    %c0_i32 = arith.constant 0 : i32
    %c0_i32_0 = arith.constant 0 : i32
    %c0_i32_1 = arith.constant 0 : i32
    return %c0_i32, %c0_i32_0 : i32, i32
  }
  func.func @transform_2(%arg0: i32) -> (i32, i32) {
    %c0_i32 = arith.constant 0 : i32
    %c0_i32_0 = arith.constant 0 : i32
    %c0_i32_1 = arith.constant 0 : i32
    return %c0_i32, %c0_i32_0 : i32, i32
  }
  func.func @transform_3(%arg0: i32) -> (i32, i32) {
    %c0_i32 = arith.constant 0 : i32
    %c0_i32_0 = arith.constant 0 : i32
    %c0_i32_1 = arith.constant 0 : i32
    return %c0_i32, %c0_i32_0 : i32, i32
  }
  func.func @transform_4(%arg0: i32) -> (i32, i32) {
    %c0_i32 = arith.constant 0 : i32
    %c0_i32_0 = arith.constant 0 : i32
    %c0_i32_1 = arith.constant 0 : i32
    return %c0_i32, %c0_i32_0 : i32, i32
  }
  func.func @transform_5(%arg0: i32) -> (i32, i32) {
    %c0_i32 = arith.constant 0 : i32
    %c0_i32_0 = arith.constant 0 : i32
    %c0_i32_1 = arith.constant 0 : i32
    return %c0_i32, %c0_i32_0 : i32, i32
  }
  func.func @transform_6(%arg0: i32) -> (i32, i32) {
    %c0_i32 = arith.constant 0 : i32
    %c0_i32_0 = arith.constant 0 : i32
    %c0_i32_1 = arith.constant 0 : i32
    return %c0_i32, %c0_i32_0 : i32, i32
  }
  func.func @transform_7(%arg0: i32) -> (i32, i32) {
    %c0_i32 = arith.constant 0 : i32
    %c0_i32_0 = arith.constant 0 : i32
    %c0_i32_1 = arith.constant 0 : i32
    return %c0_i32, %c0_i32_0 : i32, i32
  }
  func.func @transform_8(%arg0: i32) -> (i32, i32) {
    %c0_i32 = arith.constant 0 : i32
    %c0_i32_0 = arith.constant 0 : i32
    %c0_i32_1 = arith.constant 0 : i32
    return %c0_i32, %c0_i32_0 : i32, i32
  }
  func.func @transform_9(%arg0: i32) -> (i32, i32) {
    %c0_i32 = arith.constant 0 : i32
    %c0_i32_0 = arith.constant 0 : i32
    %c0_i32_1 = arith.constant 0 : i32
    return %c0_i32, %c0_i32_0 : i32, i32
  }
  func.func @transform_10(%arg0: i32) -> (i32, i32, i32) {
    %c0_i32 = arith.constant 0 : i32
    %c0_i32_0 = arith.constant 0 : i32
    %c0_i32_1 = arith.constant 0 : i32
    return %arg0, %c0_i32, %c0_i32_0 : i32, i32, i32
  }
  func.func @transform_11(%arg0: i32) -> (i32, i32, i32, i32) {
    %c0_i32 = arith.constant 0 : i32
    %c0_i32_0 = arith.constant 0 : i32
    %c0_i32_1 = arith.constant 0 : i32
    %c0_i32_2 = arith.constant 0 : i32
    return %c0_i32, %arg0, %c0_i32_0, %c0_i32_1 : i32, i32, i32, i32
  }
}

</mosaic_0001>

<bundles_post_ra>
// kernel: tpu_custom_call.1
= control target key start
LH: loop header
LB: loop body
LE: loop exit
PB: predicated region body
PF: predicated region fallthrough
CT: control target
= control target key end

     0   :  { %s3381_s0 = inlined_call_operand.vmem [shape: f32[4,8,32], index: 0, kind: input, shape index: {}]   ;;  %s3382_s1 = inlined_call_operand.vmem [shape: f32[32,96], index: 1, kind: input, shape index: {}]   ;;  %s3383_s2 = inlined_call_operand.vmem [shape: f32[1,32], index: 2, kind: input, shape index: {}]   ;;  %s3384_s3 = inlined_call_operand.vmem [shape: f32[1,32], index: 3, kind: input, shape index: {}]   ;;  %s3385_s4 = inlined_call_operand.vmem [shape: f32[32,128], index: 4, kind: input, shape index: {}]   ;;  %s3386_s5 = inlined_call_operand.vmem [shape: f32[1,128], index: 5, kind: input, shape index: {}]   ;;  %s3387_s6 = inlined_call_operand.vmem [shape: f32[128,32], index: 6, kind: input, shape index: {}]   ;;  %s3388_s7 = inlined_call_operand.vmem [shape: f32[1,32], index: 7, kind: input, shape index: {}]   ;;  %s3389_s8 = inlined_call_operand.vmem [shape: f32[1,32], index: 8, kind: input, shape index: {}]   ;;  %s3390_s9 = inlined_call_operand.vmem [shape: f32[1,32], index: 9, kind: input, shape index: {}]   ;;  %s3391_s10 = inlined_call_operand.hbm [shape: f32[4,8,32], index: 10, kind: output, shape index: {0}]   ;;  %s3392_s11 = inlined_call_operand.hbm [shape: f32[4,4,8,8], index: 11, kind: output, shape index: {1}]  }
   0x1   :  { %3395 = sst [smem:[#allocation11_spill]] %s3381_s0 }
   0x2   :  { %3396 = sst [smem:[#allocation12_spill]] %s3382_s1 }
   0x3   :  { %3397 = sst [smem:[#allocation13_spill]] %s3383_s2 }
   0x4   :  { %3398 = sst [smem:[#allocation14_spill]] %s3384_s3 }
   0x5   :  { %17 = vsyncpa [#allocation4], 0 }
   0x6   :  { %19 = vsyncpa [#allocation4 + $0x1], 0 }
   0x7   :  { %20 = vsyncpa [#allocation6], 0 }
   0x8   :  { %22 = vsyncpa [#allocation6 + $0x1], 0  ;;  %s2906_s17 = smov 0   ;;  %s2908_s18 = smov 0  }
   0x9   :  { %s2910_s19 = smov 0   ;;  %s2912_s20 = smov 0  }
   0xa LB: > { %s2927_s21 = sadd.s32 4294967295, %s2825_s20   ;;  %s2352_s22 = sadd.s32 4294967294, %s2825_s20   ;;  %s2825_s20 = sphi %s2912_s20, %s3413_s20   ;;  %s2821_s19 = sphi %s2910_s19, %s3412_s19   ;;  %s2817_s18 = sphi %s2908_s18, %s3411_s18   ;;  %s2813_s17 = sphi %s2906_s17, %s3410_s17  }
   0xb   : > { %s2931_s23 = sadd.s32 1, %s2825_s20   ;;  %s250_s24 = sadd.s32 1, %s2821_s19 }
   0xc   : > { %s247_s25 = ssub.s32 %s2825_s20, %s2931_s23  ;;  %p260_p0 = scmp.ne.s32.totalorder %s2821_s19, %s2817_s18 }
   0xd   : > { %p248_p1 = scmp.eq.s32.totalorder %s247_s25, 0  ;;  %p261_p2 = scmp.eq.s32.totalorder %s2927_s21, 1 }
   0xe   : > { %p266_p3 = scmp.ne.s32.totalorder %s2817_s18, %s2813_s17  ;;  %p267_p4 = scmp.eq.s32.totalorder %s2352_s22, 1 }
   0xf   : > { %s2942_s26 = scalar_select %p248_p1, %s2821_s19, %s250_s24  }
  0x10   : > { %p2944_p5 = por %p261_p2, %p260_p0  ;;  %p2948_p6 = por %p267_p4, %p266_p3 }
  0x11   : > { %p2355_p7 = scmp.ge.s32.totalorder %s2825_s20, 1  ;;  %p347_p8 = scmp.lt.s32.totalorder %s2825_s20, 3 }
  0x13   : > { %p348_p9 = pnand %p2355_p7, %p347_p8 }
  0x14   : > { %s3401_s1 = sld [smem:[#allocation12_spill]] (!%p348_p9)  ;;  %s2358_s16 = sshll.u32 (!%p348_p9), %s2927_s21, 1  ;;  %vm406_vm0 = vcmask (!%p348_p9), 261120   ;;  %v2827_v8 = vmov (!%p348_p9), 0.0   ;;  %vm2828_vm1 = vmmov (!%p348_p9), 0   ;;  %vm504_vm2 = vcmask (!%p348_p9), 64512  }
  0x15   : > { %351 = sbr.rel (%p348_p9) target bundleno = 2495 (0x9bf), region = 60  ;;  %p393_p10 = scmp.lt.s32.totalorder (!%p348_p9), %s2358_s16, 3  ;;  %2502 = vmatprep.subr.mxu1 (!%p348_p9), %v2827_v8  ;;  %2504 = vmatprep.mubr.msk.f32.mxu1 (!%p348_p9), %vm2828_vm1, %v2827_v8  ;;  %v1119_v25 = vlaneseq (!%p348_p9)  ;;  %vm1880_vm4 = vcmask (!%p348_p9), 130112   ;;  %vm1891_vm5 = vcmask (!%p348_p9), 195712   ;;  %vm1902_vm6 = vcmask (!%p348_p9), 261312  }
  0x16   : > { %s3402_s0 = sld [smem:[#allocation11_spill]] (!%p348_p9)  ;;  %s2829_s13 = smov (!%p348_p9), 112  }
  0x17   : > { %s2830_s14 = smov (!%p348_p9), 120   ;;  %s2831_s15 = smov (!%p348_p9), 104   ;;  %v1120_v26 = vshrl.u32 (!%p348_p9), %v1119_v25, 7  ;;  %v1122_v27 = vand.u32 (!%p348_p9), 127, %v1119_v25 }
  0x18   : > { %s2833_s22 = smov (!%p348_p9), 64   ;;  %s3149_s24 = sand.u32 (!%p348_p9), 1, %s2817_s18  }
  0x19   : > { %v1143_v28 = vsub.s32 (!%p348_p9), %v1122_v27, %v1120_v26  ;;  %vm3062_vm3 = vcmp.gt.s32.totalorder (!%p348_p9), %v1122_v27, %v1120_v26  ;;  %s3393_s30 = smov (!%p348_p9), 8   ;;  %s3405_s2 = sld [smem:[#allocation13_spill]] (!%p348_p9) }
  0x1a   : > { %v402_v0 = vld [vmem:[%s3401_s1] sm:$0xff] (!%p348_p9)  ;;  %v403_v1 = vld [vmem:[%s3401_s1 + $0x8] sm:$0xff] (!%p348_p9)  ;;  %v404_v2 = vld [vmem:[%s3401_s1 + $0x10] sm:$0xff] (!%p348_p9)  ;;  %s3406_s3 = sld [smem:[#allocation14_spill]] (!%p348_p9) }
  0x1b   : > { %v2603_v3 = vpack.c.bf16 (!%p348_p9), %v403_v1, %v402_v0  ;;  %v405_v4 = vld [vmem:[%s3401_s1 + $0x18] sm:$0xff] (!%p348_p9)  ;;  %v1144_v29 = vcvt.s32.f32 (!%p348_p9), %v1143_v28 }
  0x1c   : > { %v2607_v5 = vpack.c.bf16 %v405_v4, %v404_v2  ;;  %s3415_s16 = smov (!%p393_p10, %s2358_s16), 3 }
  0x1d   : > { %2604 = vmatprep.subr.bf16.mxu0 %v2603_v3  ;;  %s2359_s25 = sshll.u32 %s3415_s16, 3  ;;  %s2832_s16 = smov 96   ;;  %v1145_v30 = vmul.f32 0.25, %v1144_v29  ;;  %v1146_v44 = vmul.f32 0.0625, %v1144_v29  ;;  %v1147_v55 = vmul.f32 0.015625, %v1144_v29  ;;  %v1148_v2 = vmul.f32 0.00390625, %v1144_v29 }
  0x1e   : > { %2606 = vmatpush3.bf16.msra.mxu0 %v2603_v3  ;;  %s396_s12 = scalar_lea.vmem %s3402_s0, %s2359_s25  ;;  %s2357_s25 = sshll.u32 %s3149_s24, 6 }
  0x1f   : > { %2608 = vmatprep.subr.bf16.mxu0 %v2607_v5  ;;  %v2970_v6 = vld [vmem:[%s396_s12] sm:$0xff]  ;;  %v2972_v7 = vld [vmem:[%s396_s12 + $0x8] sm:$0xff]  ;;  %s3157_s29 = scalar_lea.vmem [#allocation5], %s2357_s25  ;;  %s2835_s12 = smov 16  }
  0x20   : > { %2474 = vmatprep.mubr.msk.f32.mxu0 %vm406_vm0, %v2970_v6  ;;  %s2356_s0 = sshll.u32 %s3149_s24, 4 }
  0x22   : > { %2610 = vmatpush3.bf16.msra.mxu0 %v2607_v5 }
  0x23   : > { %2477 = vmatprep.subr.mxu0 %v2827_v8 }
  0x25   : > { %2475 = vmatmul.mubr.msk.f32.vlgmr.msra.gmra.mrb[0].mxu0 %vm406_vm0, %v2972_v7 }
  0x26   : > { %2479 = vmatprep.mubr.msk.f32.mxu0 %vm2828_vm1, %v2827_v8 }
  0xf8   : > { %v2984_v9 = vpop.f32.mrb[0].mxu0 }
  0xf9   : > { %v2986_v10 = vpop.f32.mrb[1].mxu0 }
  0xfa   : > { %494 = vrot.lane.b32.xlu1 %v2986_v10, %s2829_s13  ;;  %490 = vrot.lane.b32.xlu0 %v2986_v10, %s2830_s14 }
  0xfb   : > { %2478 = vmatpush3.xpose.msk.msra.mxu0 %vm504_vm2, %v2986_v10 }
  0xfc   : > { %2482 = vmatprep.subr.mxu0 %v2827_v8 }
  0xfe   : > { %496 = vrot.lane.b32.xlu1 %v2984_v9, %s2829_s13  ;;  %492 = vrot.lane.b32.xlu0 %v2984_v9, %s2830_s14  ;;  %s2836_s13 = smov 24  }
 0x102   : > { %500 = vrot.lane.b32.xlu1 %v2984_v9, %s2831_s15  ;;  %498 = vrot.lane.b32.xlu0 %v2986_v10, %s2831_s15  ;;  %s2837_s15 = smov [#allocation3]  }
 0x106   : > { %579 = vrot.lane.b32.xlu1 %v2984_v9, %s2832_s16  ;;  %502 = vrot.lane.b32.xlu0 %v2986_v10, %s2832_s16 }
 0x16c   : > { %v2999_v11 = vpop.permute.xlu1 %494  ;;  %v3001_v12 = vpop.permute.xlu0 %490 }
 0x16d   : > { %655 = vrot.lane.b32.xlu0 %v3001_v12, %s2832_s16 }
 0x170   : > { %v3004_v13 = vpop.permute.xlu1 %496  ;;  %v3006_v14 = vpop.permute.xlu0 %492 }
 0x171   : > { %2503 = vmatpush3.xpose.msk.msra.mxu1 %vm504_vm2, %v3004_v13  ;;  %807 = vrot.lane.b32.xlu0 %v2999_v11, %s2832_s16 }
 0x172   : > { %731 = vrot.lane.b32.xlu1 %v3006_v14, %s2832_s16  ;;  %2512 = vmatprep.subr.mxu1 %v2827_v8 }
 0x174   : > { %v3013_v15 = vpop.permute.xlu0 %498  ;;  %v3016_v16 = vpop.permute.xlu1 %500 }
 0x175   : > { %959 = vrot.lane.b32.xlu0 %v3013_v15, %s2832_s16 }
 0x176   : > { %883 = vrot.lane.b32.xlu1 %v3004_v13, %s2832_s16 }
 0x178   : > { %v503_v17 = vpop.permute.xlu0 %502  ;;  %v580_v18 = vpop.permute.xlu1 %579 }
 0x179   : > { %2480 = vmatmul.mubr.msk.f32.vlgmr.msra.gmra.mrb[2].mxu0 %vm504_vm2, %v503_v17 }
 0x17a   : > { %1035 = vrot.lane.b32.xlu1 %v3016_v16, %s2832_s16  ;;  %2483 = vmatpush3.xpose.msk.msra.mxu0 %vm504_vm2, %v2984_v9  ;;  %s2763_s16 = sshll.u32 %s2837_s15, 4  ;;  %s2764_s16 = int_to_ptr.vmem [resolvable:$false] %s2763_s16 }
 0x17b   : > { %2484 = vmatprep.mubr.msk.f32.mxu0 %vm2828_vm1, %v2827_v8  ;;  %2487 = vmatprep.subr.mxu0 %v2827_v8 }
 0x17d   : > { %2485 = vmatmul.mubr.msk.f32.vlgmr.msra.gmra.mrb[4].mxu0 %vm504_vm2, %v580_v18 }
 0x17e   : > { %2488 = vmatpush3.xpose.msk.msra.mxu0 %vm504_vm2, %v3001_v12  ;;  %2489 = vmatprep.mubr.msk.f32.mxu0 %vm2828_vm1, %v2827_v8 }
 0x17f   : > { %2492 = vmatprep.subr.mxu0 %v2827_v8 }
 0x1df   : > { %v656_v19 = vpop.permute.xlu0 %655 }
 0x1e0   : > { %2490 = vmatmul.mubr.msk.f32.vlgmr.msra.gmra.mrb[6].mxu0 %vm504_vm2, %v656_v19 }
 0x1e1   : > { %2493 = vmatpush3.xpose.msk.msra.mxu0 %vm504_vm2, %v3006_v14  ;;  %2494 = vmatprep.mubr.msk.f32.mxu0 %vm2828_vm1, %v2827_v8 }
 0x1e2   : > { %2497 = vmatprep.subr.mxu0 %v2827_v8 }
 0x1e3   : > { %v808_v21 = vpop.permute.xlu0 %807 }
 0x1e4   : > { %v732_v20 = vpop.permute.xlu1 %731 }
 0x1e5   : > { %2495 = vmatmul.mubr.msk.f32.vlgmr.msra.gmra.mrb[8].mxu0 %vm504_vm2, %v732_v20 }
 0x1e6   : > { %2498 = vmatpush3.xpose.msk.msra.mxu0 %vm504_vm2, %v2999_v11  ;;  %2499 = vmatprep.mubr.msk.f32.mxu0 %vm2828_vm1, %v2827_v8 }
 0x1e7   : > { %2507 = vmatprep.subr.mxu0 %v2827_v8  ;;  %v960_v23 = vpop.permute.xlu0 %959 }
 0x1e8   : > { %v884_v22 = vpop.permute.xlu1 %883 }
 0x1e9   : > { %2500 = vmatmul.mubr.msk.f32.vlgmr.msra.gmra.mrb[10].mxu0 %vm504_vm2, %v808_v21  ;;  %2505 = vmatmul.mubr.msk.f32.vlgmr.msra.gmra.mrb[0].mxu1 %vm504_vm2, %v884_v22 }
 0x1ea   : > { %2508 = vmatpush3.xpose.msk.msra.mxu0 %vm504_vm2, %v3013_v15  ;;  %2513 = vmatpush3.xpose.msk.msra.mxu1 %vm504_vm2, %v3016_v16 }
 0x1eb   : > { %2514 = vmatprep.mubr.msk.f32.mxu1 %vm2828_vm1, %v2827_v8  ;;  %2509 = vmatprep.mubr.msk.f32.mxu0 %vm2828_vm1, %v2827_v8 }
 0x1ec   : > { %v1036_v24 = vpop.permute.xlu1 %1035  ;;  %2517 = vmatprep.subr.mxu0 %v2827_v8  ;;  %2522 = vmatprep.subr.mxu1 %v2827_v8 }
 0x1ed   : > { %2510 = vmatmul.mubr.msk.f32.vlgmr.msra.gmra.mrb[12].mxu0 %vm504_vm2, %v960_v23  ;;  %2515 = vmatmul.mubr.msk.f32.vlgmr.msra.gmra.mrb[2].mxu1 %vm504_vm2, %v1036_v24 }
 0x1ee   : > { %2519 = vmatprep.mubr.msk.f32.mxu0 %vm2828_vm1, %v2827_v8  ;;  %2524 = vmatprep.mubr.msk.f32.mxu1 %vm2828_vm1, %v2827_v8 }
 0x24c   : > { %v575_v31 = vpop.f32.mrb[2].mxu0 }
 0x24d   : > { %v1111_v32 = vmul.f32 0.17677669, %v575_v31  ;;  %v2481_v33 = vpop.f32.mrb[3].mxu0 }
 0x24f   : > { %v1149_v35 = vadd.f32 %v1145_v30, %v1111_v32 }
 0x250   : > { %v651_v36 = vpop.f32.mrb[4].mxu0 }
 0x251   : > { %v1112_v37 = vmul.f32 0.17677669, %v651_v36  ;;  %v2486_v38 = vpop.f32.mrb[5].mxu0  ;;  %v3068_v39 = vsel %vm3062_vm3, -inf, %v1149_v35 }
 0x252   : > { %v1166_v40 = vsel %vm504_vm2, %v3068_v39, -inf }
 0x253   : > { %v1150_v41 = vadd.f32 %v1145_v30, %v1112_v37  ;;  %1167 = vmax.xlane.f32.xlu0 %v1166_v40 }
 0x255   : > { %v1159_v42 = vsel %vm3062_vm3, -inf, %v1150_v41 }
 0x256   : > { %v1169_v43 = vsel %vm504_vm2, %v1159_v42, -inf }
 0x257   : > { %1170 = vmax.xlane.f32.xlu1 %v1169_v43 }
 0x268   : > { %1262 = vrot.lane.b32.xlu1 %v2986_v10, %s2833_s22 }
 0x26c   : > { %1414 = vrot.lane.b32.xlu1 %v3001_v12, %s2833_s22 }
 0x2b3   : > { %v727_v45 = vpop.f32.mrb[6].mxu0 }
 0x2b4   : > { %v1113_v46 = vmul.f32 0.17677669, %v727_v45  ;;  %v2491_v47 = vpop.f32.mrb[7].mxu0 }
 0x2b6   : > { %v1151_v48 = vadd.f32 %v1146_v44, %v1113_v46 }
 0x2b8   : > { %v803_v49 = vpop.f32.mrb[8].mxu0  ;;  %v1160_v50 = vsel %vm3062_vm3, -inf, %v1151_v48 }
 0x2b9   : > { %v1114_v51 = vmul.f32 0.17677669, %v803_v49  ;;  %v2496_v52 = vpop.f32.mrb[9].mxu0  ;;  %v1172_v53 = vsel %vm504_vm2, %v1160_v50, -inf }
 0x2ba   : > { %1173 = vmax.xlane.f32.xlu0 %v1172_v53 }
 0x2bb   : > { %v1152_v54 = vadd.f32 %v1146_v44, %v1114_v51 }
 0x2bc   : > { %v879_v56 = vpop.f32.mrb[10].mxu0  ;;  %v955_v57 = vpop.f32.mrb[0].mxu1 }
 0x2bd   : > { %v1115_v58 = vmul.f32 0.17677669, %v879_v56  ;;  %v1116_v59 = vmul.f32 0.17677669, %v955_v57  ;;  %v2501_v60 = vpop.f32.mrb[11].mxu0  ;;  %v2506_v61 = vpop.f32.mrb[1].mxu1 }
 0x2be   : > { %v1161_v62 = vsel %vm3062_vm3, -inf, %v1152_v54 }
 0x2bf   : > { %v1153_v63 = vadd.f32 %v1147_v55, %v1115_v58  ;;  %v1154_v0 = vadd.f32 %v1147_v55, %v1116_v59  ;;  %v1175_v1 = vsel %vm504_vm2, %v1161_v62, -inf }
 0x2c0   : > { %1176 = vmax.xlane.f32.xlu0 %v1175_v1  ;;  %v1031_v3 = vpop.f32.mrb[12].mxu0  ;;  %v1107_v4 = vpop.f32.mrb[2].mxu1 }
 0x2c1   : > { %v1117_v5 = vmul.f32 0.17677669, %v1031_v3  ;;  %v1118_v10 = vmul.f32 0.17677669, %v1107_v4  ;;  %v2511_v12 = vpop.f32.mrb[13].mxu0  ;;  %v2516_v17 = vpop.f32.mrb[3].mxu1 }
 0x2c2   : > { %v1163_v18 = vsel %vm3062_vm3, -inf, %v1154_v0  ;;  %v3089_v19 = vsel %vm3062_vm3, -inf, %v1153_v63 }
 0x2c3   : > { %v1155_v20 = vadd.f32 %v1148_v2, %v1117_v5  ;;  %v1156_v21 = vadd.f32 %v1148_v2, %v1118_v10  ;;  %v1181_v22 = vsel %vm504_vm2, %v1163_v18, -inf  ;;  %v1178_v23 = vsel %vm504_vm2, %v3089_v19, -inf }
 0x2c4   : > { %1182 = vmax.xlane.f32.xlu0 %v1181_v22  ;;  %1179 = vmax.xlane.f32.xlu1 %v1178_v23 }
 0x2c5   : > { %v1165_v24 = vsel %vm3062_vm3, -inf, %v1156_v21  ;;  %v3098_v25 = vsel %vm3062_vm3, -inf, %v1155_v20 }
 0x2c6   : > { %v1187_v26 = vsel %vm504_vm2, %v1165_v24, -inf  ;;  %v1184_v27 = vsel %vm504_vm2, %v3098_v25, -inf }
 0x2c8   : > { %1188 = vmax.xlane.f32.xlu0 %v1187_v26  ;;  %1185 = vmax.xlane.f32.xlu1 %v1184_v27 }
 0x2d9   : > { %1490 = vrot.lane.b32.xlu1 %v3006_v14, %s2833_s22 }
 0x2de   : > { %1338 = vrot.lane.b32.xlu0 %v2984_v9, %s2833_s22 }
 0x2e0   : > { %v1168_v28 = vpop.xlane.xlu0 %1167 }
 0x2e1   : > { %v1190_v30 = vsub.f32 %v3068_v39, %v1168_v28 }
 0x2e3   : > { %v1198_v33 = vmul.f32 1.442695, %v1190_v30 }
 0x2e4   : > { %v1171_v29 = vpop.xlane.xlu1 %1170 }
 0x2e5   : > { %v1191_v31 = vsub.f32 %v1159_v42, %v1171_v29  ;;  %2719 = vpow2.f32 %v1198_v33 }
 0x2e7   : > { %v1200_v34 = vmul.f32 1.442695, %v1191_v31 }
 0x2e8   : > { %v1263_v32 = vpop.permute.xlu1 %1262 }
 0x2e9   : > { %2518 = vmatpush3.msra.mxu0 %v1263_v32  ;;  %2721 = vpow2.f32 %v1200_v34 }
 0x2ea   : > { %2527 = vmatprep.subr.mxu0 %v2827_v8 }
 0x2ec   : > { %v1415_v58 = vpop.permute.xlu1 %1414 }
 0x2ef   : > { %v3109_v35 = vpop.eup %2719 }
 0x2f0   : > { %v1214_v14 = vsel %vm504_vm2, %v3109_v35, 0.0 }
 0x2f3   : > { %v3111_v36 = vpop.eup %2721 }
 0x2f4   : > { %v1217_v9 = vsel %vm504_vm2, %v3111_v36, 0.0 }
 0x2fd   : > { %1218 = vadd.xlane.f32.xlu0 %v1217_v9  ;;  %1215 = vadd.xlane.f32.xlu1 %v1214_v14 }
 0x347   : > { %v1174_v37 = vpop.xlane.xlu0 %1173 }
 0x348   : > { %v1192_v38 = vsub.f32 %v1160_v50, %v1174_v37 }
 0x34a   : > { %v1202_v39 = vmul.f32 1.442695, %v1192_v38 }
 0x34c   : > { %2723 = vpow2.f32 %v1202_v39 }
 0x34d   : > { %v1177_v40 = vpop.xlane.xlu0 %1176 }
 0x34e   : > { %v1193_v43 = vsub.f32 %v1161_v62, %v1177_v40 }
 0x350   : > { %v1204_v49 = vmul.f32 1.442695, %v1193_v43 }
 0x351   : > { %v1183_v41 = vpop.xlane.xlu0 %1182  ;;  %v1180_v59 = vpop.xlane.xlu1 %1179 }
 0x352   : > { %v1195_v42 = vsub.f32 %v1163_v18, %v1183_v41  ;;  %v1194_v60 = vsub.f32 %v3089_v19, %v1180_v59 }
 0x354   : > { %v1208_v44 = vmul.f32 1.442695, %v1195_v42  ;;  %v1206_v62 = vmul.f32 1.442695, %v1194_v60 }
 0x355   : > { %v1189_v45 = vpop.xlane.xlu0 %1188  ;;  %v1186_v61 = vpop.xlane.xlu1 %1185 }
 0x356   : > { %v3117_v46 = vpop.eup %2723  ;;  %2725 = vpow2.f32 %v1208_v44  ;;  %v1197_v47 = vsub.f32 %v1165_v24, %v1189_v45  ;;  %v1196_v63 = vsub.f32 %v3098_v25, %v1186_v61 }
 0x357   : > { %v1220_v48 = vsel %vm504_vm2, %v3117_v46, 0.0 }
 0x358   : > { %v1212_v51 = vmul.f32 1.442695, %v1197_v47  ;;  %1221 = vadd.xlane.f32.xlu1 %v1220_v48  ;;  %v1210_v0 = vmul.f32 1.442695, %v1196_v63 }
 0x359   : > { %v1339_v52 = vpop.permute.xlu0 %1338 }
 0x35a   : > { %2727 = vpow2.f32 %v1212_v51  ;;  %2523 = vmatpush3.msra.mxu1 %v1339_v52 }
 0x35b   : > { %2532 = vmatprep.subr.mxu1 %v2827_v8  ;;  %2729 = vpow2.f32 %v1204_v49 }
 0x35c   : > { %2731 = vpow2.f32 %v1206_v62 }
 0x35d   : > { %2733 = vpow2.f32 %v1210_v0 }
 0x360   : > { %v3122_v50 = vpop.eup %2725 }
 0x361   : > { %v1229_v53 = vsel %vm504_vm2, %v3122_v50, 0.0 }
 0x362   : > { %1230 = vadd.xlane.f32.xlu0 %v1229_v53 }
 0x364   : > { %v3126_v54 = vpop.eup %2727 }
 0x365   : > { %v1235_v55 = vsel %vm504_vm2, %v3126_v54, 0.0  ;;  %v3130_v56 = vpop.eup %2729 }
 0x366   : > { %1236 = vadd.xlane.f32.xlu0 %v1235_v55  ;;  %v1223_v57 = vsel %vm504_vm2, %v3130_v56, 0.0  ;;  %v3142_v1 = vpop.eup %2731 }
 0x367   : > { %v1226_v4 = vsel %vm504_vm2, %v3142_v1, 0.0  ;;  %v3146_v5 = vpop.eup %2733 }
 0x369   : > { %1642 = vrot.lane.b32.xlu1 %v3004_v13, %s2833_s22  ;;  %v1491_v13 = vpop.permute.xlu1 %1490 }
 0x36a   : > { %1224 = vadd.xlane.f32.xlu0 %v1223_v57 }
 0x380   : > { %1566 = vrot.lane.b32.xlu0 %v2999_v11, %s2833_s22  ;;  %v1232_v11 = vsel %vm504_vm2, %v3146_v5, 0.0 }
 0x384   : > { %1718 = vrot.lane.b32.xlu0 %v3013_v15, %s2833_s22 }
 0x38a   : > { %v1219_v2 = vpop.xlane.xlu0 %1218  ;;  %v1216_v3 = vpop.xlane.xlu1 %1215 }
 0x38b   : > { %2735 = vrcp.f32 %v1219_v2 }
 0x38c   : > { %2737 = vrcp.f32 %v1216_v3 }
 0x38d   : > { %1227 = vadd.xlane.f32.xlu1 %v1226_v4 }
 0x391   : > { %1233 = vadd.xlane.f32.xlu1 %v1232_v11 }
 0x395   : > { %v2736_v15 = vpop.eup %2735 }
 0x396   : > { %v2738_v10 = vpop.eup %2737  ;;  %v1247_v12 = vmul.f32 %v2736_v15, %v3111_v36 }
 0x397   : > { %v1246_v17 = vmul.f32 %v2738_v10, %v3109_v35  ;;  %v1955_v10 = vld [vmem:[%s3385_s4 + $0x8] sm:$0xff] }
 0x398   : > { %2525 = vmatmul.mubr.msk.f32.vlgmr.msra.gmra.mrb[4].mxu1 %vm504_vm2, %v1247_v12  ;;  %1255 = vst.msk [vmem:[%s3157_s29 + $0x8] sm:$0xff] %vm504_vm2, %v1247_v12 }
 0x399   : > { %2520 = vmatmul.mubr.msk.f32.vlgmr.msra.gmra.mrb[14].mxu0 %vm504_vm2, %v1246_v17  ;;  %2533 = vmatpush3.msra.mxu1 %v1491_v13  ;;  %1254 = vst.msk [vmem:[%s3157_s29] sm:$0xff] %vm504_vm2, %v1246_v17  ;;  %v1956_v17 = vld [vmem:[%s3385_s4 + $0x10] sm:$0xff] }
 0x39a   : > { %2528 = vmatpush3.msra.mxu0 %v1415_v58  ;;  %2529 = vmatprep.mubr.msk.f32.mxu0 %vm2828_vm1, %v2827_v8 }
 0x39b   : > { %2537 = vmatprep.subr.mxu0 %v2827_v8  ;;  %2534 = vmatprep.mubr.msk.f32.mxu1 %vm2828_vm1, %v2827_v8 }
 0x39c   : > { %2542 = vmatprep.subr.mxu1 %v2827_v8 }
 0x3a2   : > { %1794 = vrot.lane.b32.xlu1 %v3016_v16, %s2833_s22  ;;  %s3394_s22 = sshll.u32 %s2927_s21, 8 }
 0x3a3   : > { %s3312_s14 = scalar_lea.hbm %s3391_s10, %s3394_s22 }
 0x3e5   : > { %v1222_v18 = vpop.xlane.xlu1 %1221 }
 0x3e6   : > { %2739 = vrcp.f32 %v1222_v18  ;;  %v1957_v18 = vld [vmem:[%s3385_s4 + $0x18] sm:$0xff] }
 0x3e9   : > { %v1643_v30 = vpop.permute.xlu1 %1642 }
 0x3ef   : > { %v1231_v19 = vpop.xlane.xlu0 %1230 }
 0x3f0   : > { %v2740_v20 = vpop.eup %2739  ;;  %2741 = vrcp.f32 %v1231_v19  ;;  %v2615_v19 = vpack.c.bf16 %v1957_v18, %v1956_v17 }
 0x3f1   : > { %v1248_v21 = vmul.f32 %v2740_v20, %v3117_v46  ;;  %v2048_v20 = vld [vmem:[%s3387_s6] sm:$0xff] }
 0x3f3   : > { %v1237_v22 = vpop.xlane.xlu0 %1236  ;;  %2530 = vmatmul.mubr.msk.f32.vlgmr.msra.gmra.mrb[16].mxu0 %vm504_vm2, %v1248_v21  ;;  %1256 = vst.msk [vmem:[%s3157_s29 + $0x10] sm:$0xff] %vm504_vm2, %v1248_v21  ;;  %v2049_v21 = vld [vmem:[%s3387_s6 + $0x8] sm:$0xff] }
 0x3f4   : > { %2743 = vrcp.f32 %v1237_v22  ;;  %2539 = vmatprep.mubr.msk.f32.mxu0 %vm2828_vm1, %v2827_v8  ;;  %v2050_v22 = vld [vmem:[%s3387_s6 + $0x10] sm:$0xff] }
 0x3f7   : > { %v1225_v16 = vpop.xlane.xlu0 %1224 }
 0x3f8   : > { %2745 = vrcp.f32 %v1225_v16  ;;  %v2619_v16 = vpack.c.bf16 %v2049_v21, %v2048_v20 }
 0x3fa   : > { %v2742_v23 = vpop.eup %2741 }
 0x3fb   : > { %v1251_v24 = vmul.f32 %v2742_v23, %v3122_v50  ;;  %v1567_v25 = vpop.permute.xlu0 %1566  ;;  %v2051_v23 = vld [vmem:[%s3387_s6 + $0x18] sm:$0xff] }
 0x3fc   : > { %2538 = vmatpush3.msra.mxu0 %v1567_v25  ;;  %v2052_v25 = vld [vmem:[%s3387_s6 + $0x20] sm:$0xff] }
 0x3fd   : > { %2547 = vmatprep.subr.mxu0 %v2827_v8  ;;  %1259 = vst.msk [vmem:[%s3157_s29 + $0x28] sm:$0xff] %vm504_vm2, %v1251_v24 }
 0x3fe   : > { %v2744_v26 = vpop.eup %2743 }
 0x3ff   : > { %v1253_v27 = vmul.f32 %v2744_v26, %v3126_v54  ;;  %v1719_v36 = vpop.permute.xlu0 %1718  ;;  %v2053_v26 = vld [vmem:[%s3387_s6 + $0x28] sm:$0xff] }
 0x401   : > { %1261 = vst.msk [vmem:[%s3157_s29 + $0x38] sm:$0xff] %vm504_vm2, %v1253_v27 }
 0x402   : > { %v2746_v28 = vpop.eup %2745 }
 0x403   : > { %v1249_v29 = vmul.f32 %v2746_v28, %v3130_v56  ;;  %v2054_v28 = vld [vmem:[%s3387_s6 + $0x30] sm:$0xff] }
 0x405   : > { %2535 = vmatmul.mubr.msk.f32.vlgmr.msra.gmra.mrb[6].mxu1 %vm504_vm2, %v1249_v29  ;;  %1257 = vst.msk [vmem:[%s3157_s29 + $0x18] sm:$0xff] %vm504_vm2, %v1249_v29  ;;  %v2055_v29 = vld [vmem:[%s3387_s6 + $0x38] sm:$0xff] }
 0x406   : > { %2543 = vmatpush3.msra.mxu1 %v1643_v30  ;;  %2544 = vmatprep.mubr.msk.f32.mxu1 %vm2828_vm1, %v2827_v8  ;;  %v2631_v30 = vpack.c.bf16 %v2055_v29, %v2054_v28  ;;  %v2392_v28 = vld [vmem:[%s3389_s8] ss:$0 sm:$0xff] }
 0x407   : > { %2552 = vmatprep.subr.mxu1 %v2827_v8 }
 0x409   : > { %2545 = vmatmul.mubr.msk.f32.vlgmr.msra.gmra.mrb[8].mxu1 %vm504_vm2, %v1251_v24  ;;  %v2623_v24 = vpack.c.bf16 %v2051_v23, %v2050_v22 }
 0x40a   : > { %2554 = vmatprep.mubr.msk.f32.mxu1 %vm2828_vm1, %v2827_v8 }
 0x41a   : > { %v1228_v31 = vpop.xlane.xlu1 %1227 }
 0x41b   : > { %2747 = vrcp.f32 %v1228_v31  ;;  %v2056_v31 = vld [vmem:[%s3387_s6 + $0x40] sm:$0xff] }
 0x41e   : > { %v1234_v32 = vpop.xlane.xlu1 %1233 }
 0x41f   : > { %2749 = vrcp.f32 %v1234_v32  ;;  %v2057_v32 = vld [vmem:[%s3387_s6 + $0x48] sm:$0xff] }
 0x422   : > { %v1795_v33 = vpop.permute.xlu1 %1794 }
 0x423   : > { %2553 = vmatpush3.msra.mxu1 %v1795_v33  ;;  %v2635_v33 = vpack.c.bf16 %v2057_v32, %v2056_v31  ;;  %v2393_v31 = vld [vmem:[%s3390_s9] ss:$0 sm:$0xff] }
 0x424   : > { %2555 = vmatmul.mubr.msk.f32.vlgmr.msra.gmra.mrb[10].mxu1 %vm504_vm2, %v1253_v27  ;;  %2620 = vmatprep.subr.bf16.mxu1 %v2619_v16  ;;  %v2627_v27 = vpack.c.bf16 %v2053_v26, %v2052_v25 }
 0x425   : > { %v2748_v34 = vpop.eup %2747  ;;  %2622 = vmatpush3.bf16.msra.mxu1 %v2619_v16 }
 0x426   : > { %v1250_v35 = vmul.f32 %v2748_v34, %v3142_v1  ;;  %2624 = vmatprep.subr.bf16.mxu1 %v2623_v24  ;;  %v2058_v34 = vld [vmem:[%s3387_s6 + $0x50] sm:$0xff] }
 0x428   : > { %2540 = vmatmul.mubr.msk.f32.vlgmr.msra.gmra.mrb[18].mxu0 %vm504_vm2, %v1250_v35  ;;  %1258 = vst.msk [vmem:[%s3157_s29 + $0x20] sm:$0xff] %vm504_vm2, %v1250_v35  ;;  %v2059_v35 = vld [vmem:[%s3387_s6 + $0x58] sm:$0xff] }
 0x429   : > { %v2750_v9 = vpop.eup %2749  ;;  %2548 = vmatpush3.msra.mxu0 %v1719_v36  ;;  %2549 = vmatprep.mubr.msk.f32.mxu0 %vm2828_vm1, %v2827_v8  ;;  %v2639_v36 = vpack.c.bf16 %v2059_v35, %v2058_v34 }
 0x42a   : > { %v1252_v14 = vmul.f32 %v2750_v9, %v3146_v5  ;;  %2626 = vmatpush3.bf16.msra.mxu1 %v2623_v24  ;;  %v2060_v9 = vld [vmem:[%s3387_s6 + $0x60] sm:$0xff] }
 0x42b   : > { %2628 = vmatprep.subr.bf16.mxu1 %v2627_v27 }
 0x42c   : > { %2550 = vmatmul.mubr.msk.f32.vlgmr.msra.gmra.mrb[20].mxu0 %vm504_vm2, %v1252_v14  ;;  %1260 = vst.msk [vmem:[%s3157_s29 + $0x30] sm:$0xff] %vm504_vm2, %v1252_v14  ;;  %v2061_v14 = vld [vmem:[%s3387_s6 + $0x68] sm:$0xff] }
 0x42e   : > { %2630 = vmatpush3.bf16.msra.mxu1 %v2627_v27 }
 0x42f   : > { %2632 = vmatprep.subr.bf16.mxu1 %v2631_v30 }
 0x432   : > { %2634 = vmatpush3.bf16.msra.mxu1 %v2631_v30 }
 0x433   : > { %2636 = vmatprep.subr.bf16.mxu1 %v2635_v33 }
 0x436   : > { %2638 = vmatpush3.bf16.msra.mxu1 %v2635_v33 }
 0x437   : > { %2640 = vmatprep.subr.bf16.mxu1 %v2639_v36 }
 0x43a   : > { %2642 = vmatpush3.bf16.msra.mxu1 %v2639_v36 }
 0x46b   : > { %v1410_v37 = vpop.f32.mrb[4].mxu1 }
 0x46c   : > { %v1334_v38 = vpop.f32.mrb[14].mxu0  ;;  %1871 = vst.msk [vmem:[#allocation2 + $0x8] sm:$0xff] %vm504_vm2, %v1410_v37  ;;  %v2526_v39 = vpop.f32.mrb[5].mxu1  ;;  %v2643_v37 = vpack.c.bf16 %v2061_v14, %v2060_v9 }
 0x46d   : > { %1870 = vst.msk [vmem:[#allocation2] sm:$0xff] %vm504_vm2, %v1334_v38  ;;  %v2521_v40 = vpop.f32.mrb[15].mxu0 }
 0x46e   : > { %2644 = vmatprep.subr.bf16.mxu1 %v2643_v37 }
 0x46f   : > { %2646 = vmatpush3.bf16.msra.mxu1 %v2643_v37 }
 0x4c6   : > { %v1486_v41 = vpop.f32.mrb[16].mxu0 }
 0x4c7   : > { %1874 = vrot.lane.b32.xlu0 %v1486_v41, %s3393_s30  ;;  %v2531_v42 = vpop.f32.mrb[17].mxu0 }
 0x4d8   : > { %v1562_v8 = vpop.f32.mrb[6].mxu1 }
 0x4d9   : > { %1876 = vrot.lane.b32.xlu1 %v1562_v8, %s3393_s30  ;;  %v2536_v43 = vpop.f32.mrb[7].mxu1  ;;  %s384_s30 = scalar_lea.vmem [#allocation3], %s2356_s0 }
 0x4da   : > { %s2213_s25 = sshll.u32 %s384_s30, 4  ;;  %s3314_s25 = int_to_ptr.vmem [resolvable:$true] %s2213_s25 }
 0x4db   : > { %s2759_s1 = scalar_lea.vmem %s3314_s25, 256  ;;  %p2766_p0 = scmp.lt.s32.totalorder %s3314_s25, %s2764_s16 }
 0x4dc   : > { %v1714_v44 = vpop.f32.mrb[8].mxu1  ;;  %p2760_p11 = scmp.ne.s32.totalorder %s3314_s25, %s2759_s1 }
 0x4dd   : > { %1887 = vrot.lane.b32.xlu1 %v1714_v44, %s2835_s12  ;;  %v2546_v45 = vpop.f32.mrb[9].mxu1  ;;  %v2386_v44 = vld [vmem:[%s3405_s2] ss:$0 sm:$0xff] }
 0x4de   : > { %p2761_p12 = pnand %p2760_p11, %p2944_p5 }
 0x4e0   : > { %p2762_p13 = pneg %p2761_p12 }
 0x4f7   : > { %v1866_v46 = vpop.f32.mrb[10].mxu1 }
 0x4f8   : > { %1898 = vrot.lane.b32.xlu1 %v1866_v46, %s2836_s13  ;;  %v2556_v47 = vpop.f32.mrb[11].mxu1  ;;  %v2387_v46 = vld [vmem:[%s3406_s3] ss:$0 sm:$0xff] }
 0x4fb   : > { %v1638_v48 = vpop.f32.mrb[18].mxu0 }
 0x4fc   : > { %1885 = vrot.lane.b32.xlu0 %v1638_v48, %s2835_s12  ;;  %v2541_v49 = vpop.f32.mrb[19].mxu0  ;;  %s2765_s12 = scalar_lea.vmem %s2764_s16, 512 }
 0x4fd   : > { %p2767_p1 = scmp.lt.s32.totalorder %s2765_s12, %s2759_s1 }
 0x4ff   : > { %v1790_v51 = vpop.f32.mrb[20].mxu0  ;;  %p2768_p2 = por %p2767_p1, %p2766_p0 }
 0x500   : > { %1896 = vrot.lane.b32.xlu0 %v1790_v51, %s2836_s13  ;;  %v2551_v52 = vpop.f32.mrb[21].mxu0 }
 0x501   : > { %p2769_p3 = pnand %p2768_p2, %p2762_p13 }
 0x539   : > { %v1875_v50 = vpop.permute.xlu0 %1874 }
 0x53a   : > { %1881 = vst.msk [vmem:[#allocation2] sm:$0xff] %vm1880_vm4, %v1875_v50 }
 0x54b   : > { %v1877_v53 = vpop.permute.xlu1 %1876 }
 0x54c   : > { %1882 = vst.msk [vmem:[#allocation2 + $0x8] sm:$0xff] %vm1880_vm4, %v1877_v53  ;;  %v2062_v53 = vld [vmem:[%s3387_s6 + $0x70] sm:$0xff] }
 0x54f   : > { %v1888_v54 = vpop.permute.xlu1 %1887 }
 0x550   : > { %1893 = vst.msk [vmem:[#allocation2 + $0x8] sm:$0xff] %vm1891_vm5, %v1888_v54  ;;  %v2063_v54 = vld [vmem:[%s3387_s6 + $0x78] sm:$0xff] }
 0x56a   : > { %v1899_v55 = vpop.permute.xlu1 %1898 }
 0x56b   : > { %1904 = vst.msk [vmem:[#allocation2 + $0x8] sm:$0xff] %vm1902_vm6, %v1899_v55  ;;  %v2647_v55 = vpack.c.bf16 %v2063_v54, %v2062_v53 }
 0x56d   : > { %2648 = vmatprep.subr.bf16.mxu1 %v2647_v55 }
 0x56e   : > { %v1886_v56 = vpop.permute.xlu0 %1885  ;;  %2650 = vmatpush3.bf16.msra.mxu1 %v2647_v55 }
 0x56f   : > { %1892 = vst.msk [vmem:[#allocation2] sm:$0xff] %vm1891_vm5, %v1886_v56  ;;  %v2388_v56 = vld [vmem:[%s3386_s5] ss:$0 sm:$0xff] }
 0x572   : > { %v1897_v57 = vpop.permute.xlu0 %1896  ;;  %v1906_v58 = vld [vmem:[#allocation2 + $0x8] sm:$0xff] }
 0x573   : > { %1903 = vst.msk [vmem:[#allocation2] sm:$0xff] %vm1902_vm6, %v1897_v57  ;;  %v1908_v59 = vadd.f32 %v1906_v58, %v2972_v7 }
 0x575   : > { %v1914_v60 = vsel %vm406_vm0, %v1908_v59, 0.0 }
 0x576   : > { %1915 = vadd.xlane.f32.xlu1 %v1914_v60 }
 0x57a   : > { %v1905_v61 = vld [vmem:[#allocation2] sm:$0xff] }
 0x57b   : > { %v1907_v62 = vadd.f32 %v1905_v61, %v2970_v6  ;;  %v1954_v6 = vld [vmem:[%s3385_s4] sm:$0xff] }
 0x57c   : > { %v2611_v12 = vpack.c.bf16 %v1955_v10, %v1954_v6 }
 0x57d   : > { %v1911_v63 = vsel %vm406_vm0, %v1907_v62, 0.0 }
 0x57e   : > { %1912 = vadd.xlane.f32.xlu0 %v1911_v63  ;;  %2612 = vmatprep.subr.bf16.mxu0 %v2611_v12  ;;  %v2391_v63 = vld [vmem:[%s3388_s7] ss:$0 sm:$0xff] }
 0x57f   : > { %2614 = vmatpush3.bf16.msra.mxu0 %v2611_v12 }
 0x580   : > { %2616 = vmatprep.subr.bf16.mxu0 %v2615_v19 }
 0x583   : > { %2618 = vmatpush3.bf16.msra.mxu0 %v2615_v19 }
 0x603   : > { %v1916_v0 = vpop.xlane.xlu1 %1915 }
 0x604   : > { %v1919_v13 = vmul.f32 0.03125, %v1916_v0 }
 0x606   : > { %v3214_v3 = vsub.f32 %v1908_v59, %v1919_v13 }
 0x608   : > { %v1923_v7 = vmul.f32 %v3214_v3, %v3214_v3 }
 0x60a   : > { %v1927_v15 = vsel %vm406_vm0, %v1923_v7, 0.0 }
 0x60b   : > { %v1913_v1 = vpop.xlane.xlu0 %1912 }
 0x60c   : > { %v1918_v2 = vmul.f32 0.03125, %v1913_v1 }
 0x60e   : > { %v1920_v4 = vsub.f32 %v1907_v62, %v1918_v2 }
 0x610   : > { %v1922_v5 = vmul.f32 %v1920_v4, %v1920_v4 }
 0x612   : > { %v1924_v11 = vsel %vm406_vm0, %v1922_v5, 0.0 }
 0x613   : > { %1925 = vadd.xlane.f32.xlu0 %v1924_v11 }
 0x617   : > { %1928 = vadd.xlane.f32.xlu0 %v1927_v15 }
 0x6a0   : > { %v1926_v38 = vpop.xlane.xlu0 %1925 }
 0x6a1   : > { %v1930_v39 = vmul.f32 0.03125, %v1926_v38 }
 0x6a3   : > { %v1932_v40 = vadd.f32 1e-05, %v1930_v39 }
 0x6a4   : > { %v1929_v41 = vpop.xlane.xlu0 %1928 }
 0x6a5   : > { %2751 = vrsqrt.f32 %v1932_v40  ;;  %v1931_v42 = vmul.f32 0.03125, %v1929_v41 }
 0x6a7   : > { %v1933_v8 = vadd.f32 1e-05, %v1931_v42 }
 0x6a9   : > { %2753 = vrsqrt.f32 %v1933_v8 }
 0x6af   : > { %v2752_v43 = vpop.eup %2751 }
 0x6b0   : > { %v1936_v45 = vmul.f32 %v2752_v43, %v1920_v4 }
 0x6b2   : > { %v1944_v47 = vmul.f32 %v2386_v44, %v1936_v45 }
 0x6b3   : > { %v2754_v48 = vpop.eup %2753 }
 0x6b4   : > { %v1937_v49 = vmul.f32 %v2754_v48, %v3214_v3  ;;  %v1952_v51 = vadd.f32 %v2387_v46, %v1944_v47 }
 0x6b6   : > { %v1945_v52 = vmul.f32 %v2386_v44, %v1937_v49  ;;  %2565 = vmatprep.mubr.msk.f32.mxu0 %vm406_vm0, %v1952_v51 }
 0x6b8   : > { %v1953_v50 = vadd.f32 %v2387_v46, %v1945_v52 }
 0x6ba   : > { %2566 = vmatmul.mubr.msk.f32.vlgmr.msra.gmra.mrb[22].mxu0 %vm406_vm0, %v1953_v50 }
 0x78d   : > { %v2567_v57 = vpop.f32.mrb[22].mxu0 }
 0x78e   : > { %v2043_v58 = vadd.f32 %v2567_v57, %v2388_v56  ;;  %v2037_v59 = vpop.f32.mrb[23].mxu0 }
 0x78f   : > { %v2038_v60 = vadd.f32 %v2388_v56, %v2037_v59 }
 0x790   : > { %v2047_v62 = vmax.f32 %v2043_v58, 0.0 }
 0x791   : > { %v2046_v61 = vmax.f32 %v2038_v60, 0.0 }
 0x793   : > { %2600 = vmatprep.mubr.f32.mxu1 %v2046_v61 }
 0x794   : > { %2601 = vmatmul.mubr.f32.vlgmr.msra.gmra.mrb[12].mxu1 %v2047_v62 }
 0x867   : > { %v2602_v0 = vpop.f32.mrb[12].mxu1 }
 0x868   : > { %v2143_v13 = vadd.f32 %v2602_v0, %v2391_v63  ;;  %v2137_v1 = vpop.f32.mrb[13].mxu1 }
 0x869   : > { %v2138_v2 = vadd.f32 %v2391_v63, %v2137_v1 }
 0x86a   : > { %v2147_v3 = vadd.f32 %v2143_v13, %v1953_v50 }
 0x86b   : > { %v2146_v4 = vadd.f32 %v2138_v2, %v1952_v51 }
 0x86c   : > { %v2153_v5 = vsel %vm406_vm0, %v2147_v3, 0.0 }
 0x86d   : > { %2154 = vadd.xlane.f32.xlu0 %v2153_v5  ;;  %v2150_v11 = vsel %vm406_vm0, %v2146_v4, 0.0 }
 0x86e   : > { %2151 = vadd.xlane.f32.xlu1 %v2150_v11 }
 0x8fa   : > { %v2155_v7 = vpop.xlane.xlu0 %2154 }
 0x8fb   : > { %v2157_v15 = vmul.f32 0.03125, %v2155_v7  ;;  %v2152_v6 = vpop.xlane.xlu1 %2151 }
 0x8fc   : > { %v2156_v10 = vmul.f32 0.03125, %v2152_v6 }
 0x8fd   : > { %v2159_v12 = vsub.f32 %v2147_v3, %v2157_v15 }
 0x8fe   : > { %v2158_v17 = vsub.f32 %v2146_v4, %v2156_v10 }
 0x8ff   : > { %v2161_v18 = vmul.f32 %v2159_v12, %v2159_v12 }
 0x900   : > { %v2160_v19 = vmul.f32 %v2158_v17, %v2158_v17 }
 0x901   : > { %v2165_v20 = vsel %vm406_vm0, %v2161_v18, 0.0 }
 0x902   : > { %2166 = vadd.xlane.f32.xlu0 %v2165_v20  ;;  %v2162_v21 = vsel %vm406_vm0, %v2160_v19, 0.0 }
 0x903   : > { %2163 = vadd.xlane.f32.xlu1 %v2162_v21 }
 0x98f   : > { %v2167_v22 = vpop.xlane.xlu0 %2166 }
 0x990   : > { %v2169_v16 = vmul.f32 0.03125, %v2167_v22  ;;  %v2164_v23 = vpop.xlane.xlu1 %2163 }
 0x991   : > { %v2168_v24 = vmul.f32 0.03125, %v2164_v23 }
 0x992   : > { %v2171_v25 = vadd.f32 1e-05, %v2169_v16 }
 0x993   : > { %v2170_v26 = vadd.f32 1e-05, %v2168_v24 }
 0x994   : > { %2755 = vrsqrt.f32 %v2171_v25 }
 0x995   : > { %2757 = vrsqrt.f32 %v2170_v26 }
 0x99e   : > { %v2756_v27 = vpop.eup %2755 }
 0x99f   : > { %v2758_v29 = vpop.eup %2757  ;;  %v2175_v30 = vmul.f32 %v2756_v27, %v2159_v12 }
 0x9a0   : > { %v2174_v32 = vmul.f32 %v2758_v29, %v2158_v17 }
 0x9a1   : > { %v2183_v33 = vmul.f32 %v2392_v28, %v2175_v30 }
 0x9a2   : > { %v2182_v34 = vmul.f32 %v2392_v28, %v2174_v32 }
 0x9a3   : > { %v2191_v35 = vadd.f32 %v2393_v31, %v2183_v33 }
 0x9a4   : > { %v2190_v36 = vadd.f32 %v2393_v31, %v2182_v34 }
 0x9a5   : > { %2193 = vst.msk [vmem:[%s384_s30 + $0x8] sm:$0xff] %vm406_vm0, %v2191_v35 }
 0x9a6   : > { %2192 = vst.msk [vmem:[%s384_s30] sm:$0xff] %vm406_vm0, %v2190_v36 }
 0x9a7   : > { %2772 = shalt.err (!%p2769_p3)
}
 0x9a8   : > { %s2773_s30 = scalar_lea.hbm %s3312_s14, 256  ;;  %s2777_s15 = scalar_lea.hbm %s3391_s10, 512 }
 0x9a9   : > { %p2774_p4 = scmp.ne.s32.totalorder %s3312_s14, %s2773_s30  ;;  %p2778_p9 = scmp.lt.u32.totalorder %s3312_s14, %s3391_s10 }
 0x9aa   : > { %p2779_p10 = scmp.lt.u32.totalorder %s2777_s15, %s2773_s30  ;;  %p2781_p12 = scmp.lt.u32.totalorder %s2773_s30, %s3312_s14 }
 0x9ab   : > { %p2775_p7 = pnand %p2774_p4, %p2944_p5 }
 0x9ac   : > { %p2780_p11 = por %p2779_p10, %p2778_p9 }
 0x9ad   : > { %p2776_p8 = pneg %p2775_p7 }
 0x9ae   : > { %p2782_p13 = por %p2781_p12, %p2780_p11 }
 0x9b0   : > { %p2783_p0 = pnand %p2782_p13, %p2776_p8 }
 0x9b2   : > { %2786 = shalt.err (!%p2783_p0)
}
 0x9b3   : > { %s2838_s1 = smov 128   ;;  %s3407_s12 = smov 8  }
 0x9b4   : > { %s3408_s2 = scalar_lea.sflag [#allocation4], %s3149_s24  ;;  %s2200_s22 = scalar_lea.sflag [#allocation6], %s3149_s24 }
 0x9b5   : > { %2651 = dma.vmem_to_hbm [thread:$0]  (%p2944_p5), %s3314_s25, 256, %s3312_s14, %s3408_s2, %s2838_s1, %s2838_s1, %s3407_s12  }
 0x9b6   : > { %s3409_s0 = sshll.u32 %s2927_s21, 8  ;;  %s2245_s16 = sshll.u32 %s3157_s29, 4  ;;  %s2246_s16 = int_to_ptr.vmem [resolvable:$true] %s2245_s16 }
 0x9b7   : > { %s2228_s30 = scalar_lea.hbm %s3392_s11, %s3409_s0  ;;  %s2839_s3 = smov 256  }
 0x9b8   : > { %2652 = sst [smem:[#allocation8]] (%p2944_p5), %s2839_s3  ;;  %s2840_s2 = smov 512  }
 0x9b9   : > { %2653 = sst [smem:[#allocation8 + $0x1]] (%p2944_p5), %s2840_s2  ;;  %s2841_s21 = smov 2  }
 0x9ba   : > { %2654 = sst [smem:[#allocation8 + $0x2]] (%p2944_p5), %s2841_s21  ;;  %s2842_s24 = smov 128  }
 0x9bb   : > { %2655 = sst [smem:[#allocation8 + $0x3]] (%p2944_p5), %s2842_s24  ;;  %s2843_s25 = smov 8  }
 0x9bc   : > { %2656 = sst [smem:[#allocation8 + $0x4]] (%p2944_p5), %s2842_s24  ;;  %s2844_s14 = smov [#allocation7]  }
 0x9bd   : > { %2657 = sst [smem:[#allocation8 + $0x5]] (%p2944_p5), %s2843_s25  ;;  %s2845_s29 = smov 0  }
 0x9be   : > { %2658 = dma.general (%p2944_p5), %s2246_s16, 1024, %s2228_s30, %s2200_s22, %s2844_s14, [#allocation8], %s2845_s29, 0  }
 0x9bf PF: > { %p2668_p1 = scmp.ge.s32.totalorder %s2825_s20, 2  ;;  %s2273_s3 = sand.u32 1, %s2813_s17  }
 0x9c0   : > { %s2274_s1 = scalar_lea.sflag [#allocation4], %s2273_s3 }
 0x9c1   : > { %p2662_p2 = pnand %p2668_p1, %p2948_p6 }
 0x9c3   : > { %2804 = dma.done.wait (!%p2662_p2), %s2274_s1, 256  }
 0x9c4   : > { %2806 = vsyncadd (!%p2662_p2), %s2274_s1, 4294967040  ;;  %s2283_s12 = scalar_lea.sflag [#allocation6], %s2273_s3 }
 0x9c5   : > { %2808 = dma.done.wait (!%p2662_p2), %s2283_s12, 1024  }
 0x9c6   : > { %2810 = vsyncadd (!%p2662_p2), %s2283_s12, 4294966272  ;;  %p25_p5 = scmp.ge.s32.totalorder %s2931_s23, 4   ;;  %s3410_s17 = smov %s2817_s18 }
 0x9c7   : > { %s3411_s18 = smov %s2821_s19  ;;  %s3412_s19 = smov %s2942_s26 }
 0x9c8   : > { %s3413_s20 = smov %s2931_s23  ;;  %27 = sbr.rel (!%p25_p5) target bundleno = 10 (0xa), region = 117 }
 0x9cf   :  { %2288 = vsyncpa [#allocation4], 1 }
 0x9d0   :  { %2290 = vsyncpa [#allocation4 + $0x1], 1 }
 0x9d1   :  { %2291 = vsyncpa [#allocation6], 1 }
 0x9d2   :  { %2293 = vsyncpa [#allocation6 + $0x1], 1 }

</bundles_post_ra>
